<compile_context>
chip_gen: v6e
topology: v6e:2x2x1
jax: 0.10.0
libtpu: 0.0.40
codegen_flags: <defaults>
</compile_context>

<pallas_src>
import functools

import jax
import jax.numpy as jnp
from jax.experimental import pallas as pl
from jax.experimental.pallas import tpu as pltpu


def _round_up(v, m):
    return ((v + m - 1) // m) * m


def _bf16_activations_supported():
    """bf16 VPU/EUP exist on v6e/v7x; keep activations f32 on v5e and older."""
    try:
        kind = jax.devices()[0].device_kind.lower()
    except Exception:
        return False
    return ("v6" in kind) or ("v7" in kind)


def pinn_kernel(xT_ref, w_in_ref, b_in_ref, w_hid_ref, b_hid_ref,
                w_out_ref, b_out_ref, o_ref, *, nb_layer, act_dtype, precision):
    # ---- Input layer: K=2 matmul replaced by two VPU rank-1 updates (f32) ----
    x0 = xT_ref[0:1, :]                                     # (1, bt) f32, batch on lanes
    x1 = xT_ref[1:2, :]
    z = w_in_ref[:, 0:1] * x0 + w_in_ref[:, 1:2] * x1 + b_in_ref[...]   # (H, bt) f32
    h = jnp.tanh(z.astype(act_dtype))                       # EUP tanh (bf16 on v6e/v7x)

    # ---- Hidden layers (static unroll; H x H matmuls on the MXU, f32 accum) ----
    for i in range(nb_layer):
        z = jnp.dot(w_hid_ref[i], h,
                    preferred_element_type=jnp.float32,
                    precision=precision) + b_hid_ref[i]      # (H, bt) f32
        h = jnp.tanh(z.astype(act_dtype))

    # ---- Output layer: VPU mul + sublane (XLU) reduce; lane-dense (1, bt) ----
    z = jnp.sum(w_out_ref[...] * h, axis=0, keepdims=True) + b_out_ref[...]   # f32
    o_ref[...] = jax.nn.sigmoid(z)


def pinn_forward(x, params, *, batch_tile=8192, use_bf16=None):
    """PINN MLP forward as a Pallas kernel, tiled over the batch (lane axis)."""
    w_in, b_in, w_hid, b_hid, w_out, b_out = params
    n, d_in = x.shape
    nb_layer, hidden, _ = w_hid.shape

    if use_bf16 is None:
        use_bf16 = _bf16_activations_supported()
    act_dtype = jnp.bfloat16 if use_bf16 else jnp.float32
    # Full f32 matmul path when activations are f32 (matches the f32 reference);
    # bf16 operands already take a single native MXU pass.
    precision = (jax.lax.Precision.HIGHEST if act_dtype == jnp.float32
                 else jax.lax.Precision.DEFAULT)

    # Batch maps to the 128-lane axis. Pick the biggest tile that (a) does not
    # exceed the batch, (b) keeps >= 2 grid tiles when N allows it so both v7x
    # TensorCores get work. No padded input copy: Pallas masks the ragged block.
    bt = max(128, _round_up(batch_tile, 128))
    bt = min(bt, _round_up(n, 128))
    if n > 128:
        bt = min(bt, _round_up(-(-n // 2), 128))
    n_tiles = -(-n // bt)

    # Layout plumbing outside the kernel (single small transpose, no pad copy).
    xT = x.T.astype(jnp.float32)                              # (2, n)
    w_in_f = w_in.astype(jnp.float32)                         # (H, 2)
    b_in_c = b_in.reshape(hidden, 1).astype(jnp.float32)
    w_hid_a = w_hid.astype(act_dtype)                         # (L, H, H) bf16 on v6e/v7x
    b_hid_c = b_hid.reshape(nb_layer, hidden, 1).astype(jnp.float32)
    w_out_c = w_out.reshape(hidden, 1).astype(jnp.float32)
    b_out_c = b_out.reshape(1, 1).astype(jnp.float32)

    kernel = functools.partial(pinn_kernel, nb_layer=nb_layer,
                               act_dtype=act_dtype, precision=precision)

    flops = 2 * n * (d_in * hidden + nb_layer * hidden * hidden + hidden)
    transcendentals = n * ((nb_layer + 1) * hidden + 1)
    bytes_accessed = (4 * (d_in * n + n)
                      + 4 * (w_in_f.size + b_in_c.size + b_hid_c.size
                             + w_out_c.size + b_out_c.size)
                      + int(w_hid_a.size) * int(w_hid_a.dtype.itemsize))

    out = pl.pallas_call(
        kernel,
        out_shape=jax.ShapeDtypeStruct((1, n), jnp.float32),
        grid_spec=pltpu.PrefetchScalarGridSpec(
            num_scalar_prefetch=0,
            grid=(n_tiles,),
            in_specs=[
                pl.BlockSpec((d_in, bt), lambda i: (0, i)),               # x^T tile
                pl.BlockSpec((hidden, d_in), lambda i: (0, 0)),           # W_in (out,in)
                pl.BlockSpec((hidden, 1), lambda i: (0, 0)),              # b_in column
                pl.BlockSpec((nb_layer, hidden, hidden),
                             lambda i: (0, 0, 0)),                        # W_hid stack
                pl.BlockSpec((nb_layer, hidden, 1), lambda i: (0, 0, 0)), # b_hid stack
                pl.BlockSpec((hidden, 1), lambda i: (0, 0)),              # W_out column
                pl.BlockSpec((1, 1), lambda i: (0, 0)),                   # b_out
            ],
            out_specs=pl.BlockSpec((1, bt), lambda i: (0, i)),            # lane-dense out
        ),
        compiler_params=pltpu.CompilerParams(
            dimension_semantics=("parallel",),
            vmem_limit_bytes=32 * 1024 * 1024),
        cost_estimate=pl.CostEstimate(
            flops=flops,
            transcendentals=transcendentals,
            bytes_accessed=bytes_accessed),
    )(xT, w_in_f, b_in_c, w_hid_a, b_hid_c, w_out_c, b_out_c)

    return out[0].reshape(n, 1)


def init_params(key, nb_layer, hidden):
    """Deterministic init mimicking nn.Linear's U(-1/sqrt(fan_in), 1/sqrt(fan_in)).

    Weights are kept in PyTorch (out_features, in_features) layout.
    """
    keys = jax.random.split(key, 6)

    def uniform(k, shape, fan_in):
        bound = 1.0 / jnp.sqrt(jnp.float32(fan_in))
        return jax.random.uniform(k, shape, jnp.float32, -bound, bound)

    w_in = uniform(keys[0], (hidden, 2), 2)
    b_in = uniform(keys[1], (hidden,), 2)
    w_hid = uniform(keys[2], (nb_layer, hidden, hidden), hidden)
    b_hid = uniform(keys[3], (nb_layer, hidden), hidden)
    w_out = uniform(keys[4], (1, hidden), hidden)
    b_out = uniform(keys[5], (1,), hidden)
    return (w_in, b_in, w_hid, b_hid, w_out, b_out)


def reference_forward(x, params):
    """Pure-JAX reference matching the PyTorch module (x @ W^T + b), f32 precision."""
    w_in, b_in, w_hid, b_hid, w_out, b_out = params
    hp = jax.lax.Precision.HIGHEST
    h = jnp.tanh(jnp.dot(x, w_in.T, precision=hp) + b_in)
    for i in range(w_hid.shape[0]):
        h = jnp.tanh(jnp.dot(h, w_hid[i].T, precision=hp) + b_hid[i])
    return jax.nn.sigmoid(jnp.dot(h, w_out.T, precision=hp) + b_out)


if __name__ == "__main__":
    nb_layer = 3
    hidden = 32

    key = jax.random.PRNGKey(0)
    k_params, k_x1, k_x2 = jax.random.split(key, 3)
    params = init_params(k_params, nb_layer, hidden)

    # Small (r, t) collocation batch (single ragged tile), f32 path.
    x_small = jax.random.uniform(k_x1, (16, 2), jnp.float32)
    out_small = jax.block_until_ready(pinn_forward(x_small, params, use_bf16=False))
    ref_small = reference_forward(x_small, params)
    assert out_small.shape == (16, 1)
    assert jnp.allclose(out_small, ref_small, atol=1e-5, rtol=1e-5), \
        "mismatch vs JAX reference (small batch)"

    # Multi-tile path (ragged N, grid > 1, no input pad), f32 path.
    x_big = jax.random.uniform(k_x2, (300, 2), jnp.float32)
    out_big = jax.block_until_ready(pinn_forward(x_big, params, use_bf16=False))
    ref_big = reference_forward(x_big, params)
    assert out_big.shape == (300, 1)
    assert jnp.allclose(out_big, ref_big, atol=1e-5, rtol=1e-5), \
        "mismatch vs JAX reference (multi-tile)"

    # Auto-dtype path (bf16 tanh on v6e/v7x, f32 elsewhere) — loose tolerance.
    out_auto = jax.block_until_ready(pinn_forward(x_big, params))
    assert out_auto.shape == (300, 1)
    assert jnp.allclose(out_auto, ref_big, atol=5e-2, rtol=5e-2), \
        "mismatch vs JAX reference (auto dtype path)"

    print("KERNEL_OK")
</pallas_src>

<mosaic_0001>
module attributes {stable_mosaic.version = 11 : i64} {
  func.func @pinn_kernel(%arg0: i32, %arg1: memref<2x128xf32, #tpu.memory_space<vmem>>, %arg2: memref<32x2xf32, #tpu.memory_space<vmem>>, %arg3: memref<32x1xf32, #tpu.memory_space<vmem>>, %arg4: memref<3x32x32xf32, #tpu.memory_space<vmem>>, %arg5: memref<3x32x1xf32, #tpu.memory_space<vmem>>, %arg6: memref<32x1xf32, #tpu.memory_space<vmem>>, %arg7: memref<1x1xf32, #tpu.memory_space<vmem>>, %arg8: memref<1x128xf32, #tpu.memory_space<vmem>>) attributes {dimension_semantics = [#tpu.dimension_semantics<parallel>], iteration_bounds = array<i64: 1>, scalar_prefetch = 0 : i64, scratch_operands = 0 : i64, tpu.core_type = #tpu.core_type<tc>, window_params = [{transform_indices = @transform_0, window_bounds = array<i64: 2, 128>}, {pipeline_mode = #tpu.pipeline_mode<synchronous>, transform_indices = @transform_1, window_bounds = array<i64: 32, 2>}, {pipeline_mode = #tpu.pipeline_mode<synchronous>, transform_indices = @transform_2, window_bounds = array<i64: 32, 1>}, {pipeline_mode = #tpu.pipeline_mode<synchronous>, transform_indices = @transform_3, window_bounds = array<i64: 3, 32, 32>}, {pipeline_mode = #tpu.pipeline_mode<synchronous>, transform_indices = @transform_4, window_bounds = array<i64: 3, 32, 1>}, {pipeline_mode = #tpu.pipeline_mode<synchronous>, transform_indices = @transform_5, window_bounds = array<i64: 32, 1>}, {pipeline_mode = #tpu.pipeline_mode<synchronous>, transform_indices = @transform_6, window_bounds = array<i64: 1, 1>}, {transform_indices = @transform_7, window_bounds = array<i64: 1, 128>}]} {
    %c0 = arith.constant 0 : index
    %c0_0 = arith.constant 0 : index
    %0 = vector.load %arg1[%c0, %c0_0] : memref<2x128xf32, #tpu.memory_space<vmem>>, vector<1x128xf32>
    %c1 = arith.constant 1 : index
    %c0_1 = arith.constant 0 : index
    %1 = vector.load %arg1[%c1, %c0_1] : memref<2x128xf32, #tpu.memory_space<vmem>>, vector<1x128xf32>
    %c0_2 = arith.constant 0 : index
    %c0_3 = arith.constant 0 : index
    %2 = vector.load %arg2[%c0_2, %c0_3] : memref<32x2xf32, #tpu.memory_space<vmem>>, vector<32x1xf32>
    %3 = vector.broadcast %2 : vector<32x1xf32> to vector<32x128xf32>
    %4 = vector.broadcast %0 : vector<1x128xf32> to vector<32x128xf32>
    %5 = arith.mulf %3, %4 : vector<32x128xf32>
    %c0_4 = arith.constant 0 : index
    %c1_5 = arith.constant 1 : index
    %6 = vector.load %arg2[%c0_4, %c1_5] : memref<32x2xf32, #tpu.memory_space<vmem>>, vector<32x1xf32>
    %7 = vector.broadcast %6 : vector<32x1xf32> to vector<32x128xf32>
    %8 = vector.broadcast %1 : vector<1x128xf32> to vector<32x128xf32>
    %9 = arith.mulf %7, %8 : vector<32x128xf32>
    %10 = arith.addf %5, %9 : vector<32x128xf32>
    %c0_6 = arith.constant 0 : index
    %c0_7 = arith.constant 0 : index
    %11 = vector.load %arg3[%c0_6, %c0_7] : memref<32x1xf32, #tpu.memory_space<vmem>>, vector<32x1xf32>
    %12 = vector.broadcast %11 : vector<32x1xf32> to vector<32x128xf32>
    %13 = arith.addf %10, %12 : vector<32x128xf32>
    %14 = math.tanh %13 : vector<32x128xf32>
    %c0_8 = arith.constant 0 : index
    %c0_9 = arith.constant 0 : index
    %c0_10 = arith.constant 0 : index
    %15 = vector.load %arg4[%c0_8, %c0_9, %c0_10] : memref<3x32x32xf32, #tpu.memory_space<vmem>>, vector<1x32x32xf32>
    %16 = vector.shape_cast %15 : vector<1x32x32xf32> to vector<32x32xf32>
    %cst = arith.constant dense<0.000000e+00> : vector<32x128xf32>
    %17 = tpu.matmul %16, %14, %cst {dimension_numbers = #tpu.dot_dimension_numbers<[1], [0], [0], [1], [0, 0, 1, 1], [], []>, precision = #tpu.contract_precision<fp32>} : vector<32x32xf32>, vector<32x128xf32>, vector<32x128xf32> -> vector<32x128xf32>
    %c0_11 = arith.constant 0 : index
    %c0_12 = arith.constant 0 : index
    %c0_13 = arith.constant 0 : index
    %18 = vector.load %arg5[%c0_11, %c0_12, %c0_13] : memref<3x32x1xf32, #tpu.memory_space<vmem>>, vector<1x32x1xf32>
    %19 = vector.shape_cast %18 : vector<1x32x1xf32> to vector<32x1xf32>
    %20 = vector.broadcast %19 : vector<32x1xf32> to vector<32x128xf32>
    %21 = arith.addf %17, %20 : vector<32x128xf32>
    %22 = math.tanh %21 : vector<32x128xf32>
    %c1_14 = arith.constant 1 : index
    %c0_15 = arith.constant 0 : index
    %c0_16 = arith.constant 0 : index
    %23 = vector.load %arg4[%c1_14, %c0_15, %c0_16] : memref<3x32x32xf32, #tpu.memory_space<vmem>>, vector<1x32x32xf32>
    %24 = vector.shape_cast %23 : vector<1x32x32xf32> to vector<32x32xf32>
    %cst_17 = arith.constant dense<0.000000e+00> : vector<32x128xf32>
    %25 = tpu.matmul %24, %22, %cst_17 {dimension_numbers = #tpu.dot_dimension_numbers<[1], [0], [0], [1], [0, 0, 1, 1], [], []>, precision = #tpu.contract_precision<fp32>} : vector<32x32xf32>, vector<32x128xf32>, vector<32x128xf32> -> vector<32x128xf32>
    %c1_18 = arith.constant 1 : index
    %c0_19 = arith.constant 0 : index
    %c0_20 = arith.constant 0 : index
    %26 = vector.load %arg5[%c1_18, %c0_19, %c0_20] : memref<3x32x1xf32, #tpu.memory_space<vmem>>, vector<1x32x1xf32>
    %27 = vector.shape_cast %26 : vector<1x32x1xf32> to vector<32x1xf32>
    %28 = vector.broadcast %27 : vector<32x1xf32> to vector<32x128xf32>
    %29 = arith.addf %25, %28 : vector<32x128xf32>
    %30 = math.tanh %29 : vector<32x128xf32>
    %c2 = arith.constant 2 : index
    %c0_21 = arith.constant 0 : index
    %c0_22 = arith.constant 0 : index
    %31 = vector.load %arg4[%c2, %c0_21, %c0_22] : memref<3x32x32xf32, #tpu.memory_space<vmem>>, vector<1x32x32xf32>
    %32 = vector.shape_cast %31 : vector<1x32x32xf32> to vector<32x32xf32>
    %cst_23 = arith.constant dense<0.000000e+00> : vector<32x128xf32>
    %33 = tpu.matmul %32, %30, %cst_23 {dimension_numbers = #tpu.dot_dimension_numbers<[1], [0], [0], [1], [0, 0, 1, 1], [], []>, precision = #tpu.contract_precision<fp32>} : vector<32x32xf32>, vector<32x128xf32>, vector<32x128xf32> -> vector<32x128xf32>
    %c2_24 = arith.constant 2 : index
    %c0_25 = arith.constant 0 : index
    %c0_26 = arith.constant 0 : index
    %34 = vector.load %arg5[%c2_24, %c0_25, %c0_26] : memref<3x32x1xf32, #tpu.memory_space<vmem>>, vector<1x32x1xf32>
    %35 = vector.shape_cast %34 : vector<1x32x1xf32> to vector<32x1xf32>
    %36 = vector.broadcast %35 : vector<32x1xf32> to vector<32x128xf32>
    %37 = arith.addf %33, %36 : vector<32x128xf32>
    %38 = math.tanh %37 : vector<32x128xf32>
    %c0_27 = arith.constant 0 : index
    %c0_28 = arith.constant 0 : index
    %39 = vector.load %arg6[%c0_27, %c0_28] : memref<32x1xf32, #tpu.memory_space<vmem>>, vector<32x1xf32>
    %40 = vector.broadcast %39 : vector<32x1xf32> to vector<32x128xf32>
    %41 = arith.mulf %40, %38 : vector<32x128xf32>
    %cst_29 = arith.constant dense<0.000000e+00> : vector<128xf32>
    %42 = vector.multi_reduction <add>, %41, %cst_29 [0] : vector<32x128xf32> to vector<128xf32>
    %43 = vector.shape_cast %42 : vector<128xf32> to vector<1x128xf32>
    %c0_30 = arith.constant 0 : index
    %c0_31 = arith.constant 0 : index
    %44 = vector.load %arg7[%c0_30, %c0_31] : memref<1x1xf32, #tpu.memory_space<vmem>>, vector<1x1xf32>
    %45 = vector.broadcast %44 : vector<1x1xf32> to vector<1x128xf32>
    %46 = arith.addf %43, %45 : vector<1x128xf32>
    %47 = arith.negf %46 : vector<1x128xf32>
    %48 = math.exp %47 : vector<1x128xf32>
    %cst_32 = arith.constant 1.000000e+00 : f32
    %49 = vector.broadcast %cst_32 : f32 to vector<1x128xf32>
    %50 = arith.addf %49, %48 : vector<1x128xf32>
    %51 = arith.divf %49, %50 : vector<1x128xf32>
    %c0_33 = arith.constant 0 : index
    %c0_34 = arith.constant 0 : index
    %52 = vector.load %arg8[%c0_33, %c0_34] : memref<1x128xf32, #tpu.memory_space<vmem>>, vector<1x128xf32>
    tpu.vector_store %arg8[%c0_33, %c0_34], %51 {strides = array<i32>} : memref<1x128xf32, #tpu.memory_space<vmem>>, vector<1x128xf32>,
    return
  }
  func.func @transform_0(%arg0: i32) -> (i32, i32) {
    %c0_i32 = arith.constant 0 : i32
    %c0_i32_0 = arith.constant 0 : i32
    return %c0_i32, %arg0 : i32, i32
  }
  func.func @transform_1(%arg0: i32) -> (i32, i32) {
    %c0_i32 = arith.constant 0 : i32
    %c0_i32_0 = arith.constant 0 : i32
    %c0_i32_1 = arith.constant 0 : i32
    return %c0_i32, %c0_i32_0 : i32, i32
  }
  func.func @transform_2(%arg0: i32) -> (i32, i32) {
    %c0_i32 = arith.constant 0 : i32
    %c0_i32_0 = arith.constant 0 : i32
    %c0_i32_1 = arith.constant 0 : i32
    return %c0_i32, %c0_i32_0 : i32, i32
  }
  func.func @transform_3(%arg0: i32) -> (i32, i32, i32) {
    %c0_i32 = arith.constant 0 : i32
    %c0_i32_0 = arith.constant 0 : i32
    %c0_i32_1 = arith.constant 0 : i32
    %c0_i32_2 = arith.constant 0 : i32
    return %c0_i32, %c0_i32_0, %c0_i32_1 : i32, i32, i32
  }
  func.func @transform_4(%arg0: i32) -> (i32, i32, i32) {
    %c0_i32 = arith.constant 0 : i32
    %c0_i32_0 = arith.constant 0 : i32
    %c0_i32_1 = arith.constant 0 : i32
    %c0_i32_2 = arith.constant 0 : i32
    return %c0_i32, %c0_i32_0, %c0_i32_1 : i32, i32, i32
  }
  func.func @transform_5(%arg0: i32) -> (i32, i32) {
    %c0_i32 = arith.constant 0 : i32
    %c0_i32_0 = arith.constant 0 : i32
    %c0_i32_1 = arith.constant 0 : i32
    return %c0_i32, %c0_i32_0 : i32, i32
  }
  func.func @transform_6(%arg0: i32) -> (i32, i32) {
    %c0_i32 = arith.constant 0 : i32
    %c0_i32_0 = arith.constant 0 : i32
    %c0_i32_1 = arith.constant 0 : i32
    return %c0_i32, %c0_i32_0 : i32, i32
  }
  func.func @transform_7(%arg0: i32) -> (i32, i32) {
    %c0_i32 = arith.constant 0 : i32
    %c0_i32_0 = arith.constant 0 : i32
    return %c0_i32, %arg0 : i32, i32
  }
}

</mosaic_0001>

<bundles_post_ra>
// kernel: tpu_custom_call.1
= control target key start
LH: loop header
LB: loop body
LE: loop exit
PB: predicated region body
PF: predicated region fallthrough
CT: control target
= control target key end

     0   :  { %s3117_s0 = inlined_call_operand.vmem [shape: f32[2,16], index: 0, kind: input, shape index: {}]   ;;  %s3118_s1 = inlined_call_operand.vmem [shape: f32[32,2], index: 1, kind: input, shape index: {}]   ;;  %s3119_s2 = inlined_call_operand.vmem [shape: f32[32,1], index: 2, kind: input, shape index: {}]   ;;  %s3120_s3 = inlined_call_operand.vmem [shape: f32[3,32,32], index: 3, kind: input, shape index: {}]   ;;  %s3121_s4 = inlined_call_operand.vmem [shape: f32[3,32,1], index: 4, kind: input, shape index: {}]   ;;  %s3122_s5 = inlined_call_operand.vmem [shape: f32[32,1], index: 5, kind: input, shape index: {}]   ;;  %s3123_s6 = inlined_call_operand.<no memory space> [shape: f32[1,1], index: 6, kind: input, shape index: {}]   ;;  %s3124_s7 = inlined_call_operand.hbm [shape: f32[1,16], index: 7, kind: output, shape index: {}]  }
   0x1   :  { %v12_v0 = vstv %s3123_s6 }
   0x2   :  { %13 = vst [vmem:[#allocation2] sm:$0x1] %v12_v0 }
   0x3   :  { %v34_v1 = vld [vmem:[%s3118_s1 + $0x18] sm:$0xff]  ;;  %v33_v2 = vld [vmem:[%s3118_s1 + $0x10] sm:$0xff]  ;;  %v2654_v3 = vmov 1   ;;  %v2655_v4 = vmov 0   ;;  %v32_v5 = vld [vmem:[%s3118_s1 + $0x8] sm:$0xff] }
   0x4   :  { %2589 = vset.pattern.permute.xlu0 %v2654_v3  ;;  %2590 = vset.pattern.permute.xlu1 %v2655_v4 }
   0x5   :  { %76 = vperm.xlu0 %2589, %v34_v1   ;;  %47 = vperm.xlu1 %2590, %v33_v2  }
   0x9   :  { %2591 = vset.pattern.permute.xlu1 %v2654_v3  ;;  %68 = vperm.xlu0 %2589, %v32_v5  }
   0xa   :  { %72 = vperm.xlu1 %2591, %v33_v2  }
   0xb   :  { %14 = vsyncpa [#allocation4], 0  ;;  %v31_v6 = vld [vmem:[%s3118_s1] sm:$0xff]  ;;  %v94_v7 = vld [vmem:[%s3119_s2 + $0x18] sm:$0xff]  ;;  %vm151_vm0 = vcmask 261120  }
   0xc   :  { %v92_v8 = vld [vmem:[%s3119_s2 + $0x8] sm:$0xff]  ;;  %v130_v9 = vld [vmem:[%s3121_s4 + $0x18] sm:$0xff]  ;;  %v93_v10 = vld [vmem:[%s3119_s2 + $0x10] sm:$0xff] }
   0xd   :  { %2593 = vset.pattern.permute.xlu0 %v2655_v4  ;;  %v128_v11 = vld [vmem:[%s3121_s4 + $0x8] sm:$0xff]  ;;  %v91_v12 = vld [vmem:[%s3119_s2] sm:$0xff]  ;;  %v2180_v13 = vld [vmem:[%s3121_s4 + $0x38] sm:$0xff] }
   0xe   :  { %2592 = vset.pattern.permute.xlu1 %v2655_v4  ;;  %52 = vperm.xlu0 %2593, %v34_v1   ;;  %v129_v14 = vld [vmem:[%s3121_s4 + $0x10] sm:$0xff]  ;;  %v2178_v15 = vld [vmem:[%s3121_s4 + $0x28] sm:$0xff]  ;;  %v123_v16 = vld [vmem:[%s3120_s3] sm:$0xff] }
   0xf   :  { %42 = vperm.xlu1 %2592, %v32_v5   ;;  %v153_v17 = vsel %vm151_vm0, %v123_v16, 0  ;;  %v127_v18 = vld [vmem:[%s3121_s4] sm:$0xff]  ;;  %v2179_v22 = vld [vmem:[%s3121_s4 + $0x30] sm:$0xff]  ;;  %v2186_v29 = vld [vmem:[%s3121_s4 + $0x48] sm:$0xff] }
  0x10   :  { %v2746_v19 = vand.u32 4294901760, %v153_v17  ;;  %v2185_v20 = vld [vmem:[%s3121_s4 + $0x40] sm:$0xff]  ;;  %v2187_v24 = vld [vmem:[%s3121_s4 + $0x50] sm:$0xff]  ;;  %v2188_v31 = vld [vmem:[%s3121_s4 + $0x58] sm:$0xff] }
  0x11   :  { %v2177_v26 = vld [vmem:[%s3121_s4 + $0x20] sm:$0xff]  ;;  %v2104_v30 = vld [vmem:[%s3122_s5 + $0x10] sm:$0xff]  ;;  %v2103_v33 = vld [vmem:[%s3122_s5 + $0x8] sm:$0xff] }
  0x12   :  { %37 = vperm.xlu0 %2593, %v31_v6   ;;  %v2752_v21 = vsub.f32 %v153_v17, %v2746_v19  ;;  %2356 = vmatprep.mubr.f32.mxu1 %v2746_v19  ;;  %v2102_v28 = vld [vmem:[%s3122_s5] sm:$0xff]  ;;  %v2105_v34 = vld [vmem:[%s3122_s5 + $0x18] sm:$0xff]  ;;  %v124_v60 = vld [vmem:[%s3120_s3 + $0x8] sm:$0xff] }
  0x13   :  { %112 = vperm.xlu1 %2592, %v94_v7   ;;  %v2139_v32 = vld [vmem:[#allocation2] sm:$0x1]  ;;  %v2172_v39 = vld [vmem:[%s3117_s0 + $0x1] ss:$0 sm:$0xff]  ;;  %v125_v62 = vld [vmem:[%s3120_s3 + $0x10] sm:$0xff]  ;;  %v156_v0 = vsel %vm151_vm0, %v124_v60, 0 }
  0x14   :  { %v235_v23 = vand.u32 4294901760, %v2752_v21  ;;  %v2171_v41 = vld [vmem:[%s3117_s0] ss:$0 sm:$0xff]  ;;  %v159_v2 = vsel %vm151_vm0, %v125_v62, 0 }
  0x16   :  { %102 = vperm.xlu0 %2593, %v92_v8   ;;  %v236_v25 = vsub.f32 %v2752_v21, %v235_v23  ;;  %v2805_v8 = vand.u32 4294901760, %v159_v2 }
  0x17   :  { %2594 = vset.pattern.permute.xlu1 %v2654_v3  ;;  %v126_v3 = vld [vmem:[%s3120_s3 + $0x18] sm:$0xff] }
  0x18   :  { %64 = vperm.xlu1 %2594, %v31_v6   ;;  %v237_v27 = vand.u32 4294901760, %v236_v25  ;;  %v2803_v6 = vand.u32 4294901760, %v156_v0 }
  0x1a   :  { %148 = vperm.xlu0 %2593, %v130_v9   ;;  %2342 = vmatprep.mubr.f32.mxu0 %v237_v27  ;;  %v162_v9 = vsel %vm151_vm0, %v126_v3, 0 }
  0x1c   :  { %2595 = vset.pattern.permute.xlu1 %v2655_v4 }
  0x1d   :  { %107 = vperm.xlu1 %2595, %v93_v10  }
  0x1e   :  { %138 = vperm.xlu0 %2593, %v128_v11  }
  0x21   :  { %97 = vperm.xlu1 %2595, %v91_v12  }
  0x22   :  { %809 = vperm.xlu0 %2593, %v2180_v13   ;;  %v2813_v13 = vsub.f32 %v156_v0, %v2803_v6 }
  0x25   :  { %143 = vperm.xlu1 %2595, %v129_v14   ;;  %v2815_v14 = vand.u32 4294901760, %v162_v9 }
  0x26   :  { %799 = vperm.xlu0 %2593, %v2178_v15   ;;  %v2819_v15 = vsub.f32 %v159_v2, %v2805_v8 }
  0x29   :  { %133 = vperm.xlu1 %2595, %v127_v18  }
  0x2a   :  { %1454 = vperm.xlu0 %2593, %v2185_v20   ;;  %v245_v20 = vand.u32 4294901760, %v2813_v13 }
  0x2d   :  { %804 = vperm.xlu1 %2595, %v2179_v22   ;;  %v2825_v22 = vsub.f32 %v162_v9, %v2815_v14 }
  0x2e   :  { %1464 = vperm.xlu0 %2593, %v2187_v24   ;;  %v255_v24 = vand.u32 4294901760, %v2819_v15 }
  0x31   :  { %794 = vperm.xlu1 %2595, %v2177_v26  }
  0x32   :  { %2108 = vperm.xlu0 %2593, %v2102_v28  }
  0x35   :  { %1459 = vperm.xlu1 %2595, %v2186_v29   ;;  %v246_v29 = vsub.f32 %v2813_v13, %v245_v20 }
  0x36   :  { %2118 = vperm.xlu0 %2593, %v2104_v30   ;;  %v265_v30 = vand.u32 4294901760, %v2825_v22 }
  0x39   :  { %1469 = vperm.xlu1 %2595, %v2188_v31   ;;  %v256_v31 = vsub.f32 %v2819_v15, %v255_v24 }
  0x3a   :  { %2142 = vperm.xlu0 %2593, %v2139_v32  }
  0x3d   :  { %2113 = vperm.xlu1 %2595, %v2103_v33  }
  0x41   :  { %2123 = vperm.xlu1 %2595, %v2105_v34  }
  0x80   :  { %v48_v35 = vpop.permute.xlu1 %47  ;;  %v77_v36 = vpop.permute.xlu0 %76 }
  0x81   :  { %v86_v40 = vmul.f32 %v2172_v39, %v77_v36  ;;  %v61_v56 = vmul.f32 %v2171_v41, %v48_v35  ;;  %v247_v36 = vand.u32 4294901760, %v246_v29 }
  0x84   :  { %v69_v37 = vpop.permute.xlu0 %68 }
  0x85   :  { %v73_v38 = vpop.permute.xlu1 %72  ;;  %v84_v45 = vmul.f32 %v2172_v39, %v69_v37 }
  0x86   :  { %v85_v54 = vmul.f32 %v2172_v39, %v73_v38  ;;  %v266_v38 = vsub.f32 %v2825_v22, %v265_v30 }
  0x88   :  { %v89_v59 = vadd.f32 %v85_v54, %v61_v56 }
  0x89   :  { %v53_v42 = vpop.permute.xlu0 %52 }
  0x8a   :  { %v62_v43 = vmul.f32 %v2171_v41, %v53_v42  ;;  %v43_v44 = vpop.permute.xlu1 %42 }
  0x8b   :  { %v60_v46 = vmul.f32 %v2171_v41, %v43_v44  ;;  %v267_v44 = vand.u32 4294901760, %v266_v38 }
  0x8c   :  { %v90_v47 = vadd.f32 %v86_v40, %v62_v43 }
  0x8d   :  { %v38_v48 = vpop.permute.xlu0 %37  ;;  %v88_v51 = vadd.f32 %v84_v45, %v60_v46 }
  0x8e   :  { %v113_v49 = vpop.permute.xlu1 %112  ;;  %v59_v57 = vmul.f32 %v2171_v41, %v38_v48 }
  0x8f   :  { %v118_v50 = vadd.f32 %v113_v49, %v90_v47 }
  0x91   :  { %2596 = vtanh.f32 %v118_v50  ;;  %v103_v52 = vpop.permute.xlu0 %102 }
  0x92   :  { %v116_v53 = vadd.f32 %v103_v52, %v88_v51 }
  0x93   :  { %v65_v55 = vpop.permute.xlu1 %64 }
  0x94   :  { %2598 = vtanh.f32 %v116_v53  ;;  %v83_v58 = vmul.f32 %v2172_v39, %v65_v55  ;;  %v257_v39 = vand.u32 4294901760, %v256_v31 }
  0x96   :  { %v87_v1 = vadd.f32 %v83_v58, %v59_v57  ;;  %v149_v58 = vpop.permute.xlu0 %148 }
  0x98   :  { %v108_v61 = vpop.permute.xlu1 %107 }
  0x99   :  { %v117_v63 = vadd.f32 %v108_v61, %v89_v59 }
  0x9a   :  { %v139_v0 = vpop.permute.xlu0 %138 }
  0x9b   :  { %2600 = vtanh.f32 %v117_v63 }
  0x9c   :  { %v98_v4 = vpop.permute.xlu1 %97 }
  0x9d   :  { %v115_v5 = vadd.f32 %v98_v4, %v87_v1 }
  0x9e   :  { %v2597_v7 = vpop.eup %2596 }
  0x9f   :  { %v2808_v10 = vand.u32 4294901760, %v2597_v7  ;;  %2602 = vtanh.f32 %v115_v5 }
  0xa0   :  { %v144_v61 = vpop.permute.xlu1 %143 }
  0xa1   :  { %v2599_v11 = vpop.eup %2598  ;;  %2334 = vmatprep.subr.mxu0 %v2808_v10  ;;  %v299_v12 = vsub.f32 %v2597_v7, %v2808_v10 }
  0xa2   :  { %2335 = vmatpush3.msra.mxu0 %v2808_v10  ;;  %v2821_v16 = vand.u32 4294901760, %v2599_v11 }
  0xa3   :  { %v300_v17 = vand.u32 4294901760, %v299_v12 }
  0xa4   :  { %v313_v26 = vsub.f32 %v2599_v11, %v2821_v16  ;;  %v134_v3 = vpop.permute.xlu1 %133 }
  0xa5   :  { %v301_v18 = vsub.f32 %v299_v12, %v300_v17 }
  0xa6   :  { %v314_v33 = vand.u32 4294901760, %v313_v26 }
  0xa7   :  { %v302_v25 = vand.u32 4294901760, %v301_v18 }
  0xa8   :  { %v2601_v27 = vpop.eup %2600  ;;  %v315_v41 = vsub.f32 %v313_v26, %v314_v33 }
  0xa9   :  { %v2829_v28 = vand.u32 4294901760, %v2601_v27  ;;  %2348 = vmatprep.subr.mxu1 %v302_v25 }
  0xaa   :  { %2349 = vmatpush3.msra.mxu1 %v302_v25  ;;  %v316_v46 = vand.u32 4294901760, %v315_v41 }
  0xab   :  { %2336 = vmatprep.subr.mxu0 %v2829_v28  ;;  %v306_v32 = vsub.f32 %v2601_v27, %v2829_v28 }
  0xac   :  { %v2603_v34 = vpop.eup %2602  ;;  %2337 = vmatpush3.msra.mxu0 %v2829_v28 }
  0xad   :  { %v2841_v35 = vand.u32 4294901760, %v2603_v34  ;;  %2338 = vmatprep.subr.mxu0 %v2821_v16  ;;  %v307_v37 = vand.u32 4294901760, %v306_v32 }
  0xae   :  { %2339 = vmatpush3.msra.mxu0 %v2821_v16 }
  0xaf   :  { %2340 = vmatprep.subr.mxu0 %v2841_v35  ;;  %v308_v40 = vsub.f32 %v306_v32, %v307_v37  ;;  %v320_v42 = vsub.f32 %v2603_v34, %v2841_v35 }
  0xb0   :  { %2341 = vmatpush3.msra.mxu0 %v2841_v35 }
  0xb1   :  { %2343 = vmatmul.mubr.f32.vlgmr.msra.gmra.mxu0 %v247_v36  ;;  %2362 = vmatprep.subr.mxu0 %v299_v12  ;;  %v309_v43 = vand.u32 4294901760, %v308_v40  ;;  %v321_v45 = vand.u32 4294901760, %v320_v42 }
  0xb2   :  { %2363 = vmatpush3.msra.mxu0 %v299_v12  ;;  %2345 = vmatprep.mubr.f32.mxu0 %v257_v39 }
  0xb3   :  { %2350 = vmatprep.subr.mxu1 %v309_v43  ;;  %2364 = vmatprep.subr.mxu0 %v306_v32  ;;  %v322_v47 = vsub.f32 %v320_v42, %v321_v45 }
  0xb4   :  { %2351 = vmatpush3.msra.mxu1 %v309_v43  ;;  %2365 = vmatpush3.msra.mxu0 %v306_v32 }
  0xb5   :  { %2346 = vmatmul.mubr.f32.gmra.mxu0 %v267_v44  ;;  %2352 = vmatprep.subr.mxu1 %v316_v46  ;;  %v323_v48 = vand.u32 4294901760, %v322_v47  ;;  %v2176_v47 = vld [vmem:[%s3120_s3 + $0x38] sm:$0xff] }
  0xb6   :  { %2366 = vmatprep.subr.mxu0 %v313_v26  ;;  %2353 = vmatpush3.msra.mxu1 %v316_v46  ;;  %v2175_v46 = vld [vmem:[%s3120_s3 + $0x30] sm:$0xff] }
  0xb7   :  { %2367 = vmatpush3.msra.mxu0 %v313_v26  ;;  %2354 = vmatprep.subr.mxu1 %v323_v48 }
  0xb8   :  { %2368 = vmatprep.subr.mxu0 %v320_v42  ;;  %2355 = vmatpush3.msra.mxu1 %v323_v48 }
  0xb9   :  { %2369 = vmatpush3.msra.mxu0 %v320_v42  ;;  %2357 = vmatmul.mubr.f32.vlgmr.msra.gmra.mxu1 %v2803_v6  ;;  %v2174_v42 = vld [vmem:[%s3120_s3 + $0x28] sm:$0xff] }
  0xba   :  { %2370 = vmatprep.mubr.f32.mxu0 %v2752_v21  ;;  %2376 = vmatprep.subr.mxu1 %v2808_v10  ;;  %v2173_v21 = vld [vmem:[%s3120_s3 + $0x20] sm:$0xff] }
  0xbb   :  { %2390 = vmatprep.subr.mxu0 %v300_v17  ;;  %2371 = vmatmul.mubr.f32.vlgmr.msra.gmra.mxu0 %v2813_v13 }
  0xbc   :  { %2377 = vmatpush3.msra.mxu1 %v2808_v10  ;;  %2391 = vmatpush3.msra.mxu0 %v300_v17 }
  0xbd   :  { %2378 = vmatprep.subr.mxu1 %v2829_v28  ;;  %2392 = vmatprep.subr.mxu0 %v307_v37 }
  0xbe   :  { %2359 = vmatprep.mubr.f32.mxu1 %v2805_v8  ;;  %2379 = vmatpush3.msra.mxu1 %v2829_v28 }
  0xbf   :  { %2393 = vmatpush3.msra.mxu0 %v307_v37  ;;  %2360 = vmatmul.mubr.f32.gmra.mxu1 %v2815_v14 }
  0xc0   :  { %2380 = vmatprep.subr.mxu1 %v2821_v16  ;;  %2394 = vmatprep.subr.mxu0 %v314_v33 }
  0xc1   :  { %2373 = vmatprep.mubr.f32.mxu0 %v2819_v15  ;;  %2381 = vmatpush3.msra.mxu1 %v2821_v16 }
  0xc2   :  { %2395 = vmatpush3.msra.mxu0 %v314_v33  ;;  %2382 = vmatprep.subr.mxu1 %v2841_v35 }
  0xc3   :  { %2374 = vmatmul.mubr.f32.gmra.mxu0 %v2825_v22  ;;  %2396 = vmatprep.subr.mxu0 %v321_v45 }
  0xc4   :  { %2383 = vmatpush3.msra.mxu1 %v2841_v35  ;;  %2384 = vmatprep.mubr.f32.mxu1 %v235_v23  ;;  %v813_v23 = vsel %vm151_vm0, %v2173_v21, 0  ;;  %v819_v21 = vsel %vm151_vm0, %v2175_v46, 0 }
  0xc5   :  { %2397 = vmatpush3.msra.mxu0 %v321_v45  ;;  %2385 = vmatmul.mubr.f32.vlgmr.msra.gmra.mxu1 %v245_v20  ;;  %v2894_v49 = vand.u32 4294901760, %v813_v23  ;;  %v816_v45 = vsel %vm151_vm0, %v2174_v42, 0 }
  0xc6   :  { %2404 = vmatprep.subr.mxu1 %v2808_v10  ;;  %2398 = vmatprep.mubr.f32.mxu0 %v2746_v19  ;;  %v2914_v48 = vand.u32 4294901760, %v816_v45 }
  0xc7   :  { %2405 = vmatpush3.msra.mxu1 %v2808_v10  ;;  %2399 = vmatmul.mubr.f32.vlgmr.msra.gmra.mxu0 %v2803_v6  ;;  %v2897_v50 = vsub.f32 %v813_v23, %v2894_v49  ;;  %v822_v23 = vsel %vm151_vm0, %v2176_v47, 0 }
  0xc8   :  { %2406 = vmatprep.subr.mxu1 %v2829_v28  ;;  %2387 = vmatprep.mubr.f32.mxu1 %v255_v24 }
  0xc9   :  { %2407 = vmatpush3.msra.mxu1 %v2829_v28  ;;  %2401 = vmatprep.mubr.f32.mxu0 %v2805_v8 }
  0xca   :  { %2388 = vmatmul.mubr.f32.gmra.mxu1 %v265_v30  ;;  %2408 = vmatprep.subr.mxu1 %v2821_v16 }
  0xcb   :  { %2409 = vmatpush3.msra.mxu1 %v2821_v16  ;;  %2402 = vmatmul.mubr.f32.gmra.mxu0 %v2815_v14 }
  0xcc   :  { %2410 = vmatprep.subr.mxu1 %v2841_v35  ;;  %2412 = vmatprep.mubr.f32.mxu1 %v2746_v19  ;;  %v895_v19 = vand.u32 4294901760, %v2897_v50 }
  0xcd   :  { %2411 = vmatpush3.msra.mxu1 %v2841_v35 }
  0xce   :  { %2413 = vmatmul.mubr.f32.vlgmr.msra.gmra.mxu1 %v2803_v6  ;;  %v896_v51 = vsub.f32 %v2897_v50, %v895_v19 }
  0xcf   :  { %2415 = vmatprep.mubr.f32.mxu1 %v2805_v8 }
  0xd0   :  { %v897_v52 = vand.u32 4294901760, %v896_v51  ;;  %v2918_v51 = vand.u32 4294901760, %v819_v21 }
  0xd2   :  { %2416 = vmatmul.mubr.f32.gmra.mxu1 %v2815_v14  ;;  %2426 = vmatprep.mubr.f32.mxu0 %v897_v52  ;;  %v2921_v52 = vsub.f32 %v816_v45, %v2914_v48 }
  0xd3   :  { %2440 = vmatprep.mubr.f32.mxu1 %v2894_v49 }
 0x171   :  { %v2344_v53 = vpop.f32.mrf.mxu0 }
 0x172   :  { %v250_v1 = vadd.f32 %v2344_v53, %v139_v0 }
 0x173   :  { %v239_v54 = vpop.f32.mrf.mxu0 }
 0x174   :  { %v240_v4 = vadd.f32 %v239_v54, %v134_v3  ;;  %v2923_v54 = vand.u32 4294901760, %v822_v23 }
 0x175   :  { %v2347_v55 = vpop.f32.mrf.mxu0 }
 0x176   :  { %v270_v7 = vadd.f32 %v2347_v55, %v149_v58  ;;  %v905_v58 = vand.u32 4294901760, %v2921_v52 }
 0x177   :  { %v259_v56 = vpop.f32.mrf.mxu0 }
 0x178   :  { %v260_v11 = vadd.f32 %v259_v56, %v144_v61  ;;  %v2934_v61 = vsub.f32 %v822_v23, %v2923_v54  ;;  %v906_v3 = vsub.f32 %v2921_v52, %v905_v58 }
 0x179   :  { %v2358_v57 = vpop.f32.mrf.mxu1 }
 0x17a   :  { %v367_v5 = vadd.f32 %v2358_v57, %v250_v1  ;;  %v2928_v57 = vsub.f32 %v819_v21, %v2918_v51 }
 0x17b   :  { %v360_v59 = vpop.f32.mrf.mxu1  ;;  %v2372_v60 = vpop.f32.mrf.mxu0 }
 0x17c   :  { %v361_v8 = vadd.f32 %v360_v59, %v240_v4  ;;  %v466_v12 = vadd.f32 %v2372_v60, %v367_v5  ;;  %v915_v0 = vand.u32 4294901760, %v2928_v57  ;;  %v925_v5 = vand.u32 4294901760, %v2934_v61 }
 0x17d   :  { %v458_v63 = vpop.f32.mrf.mxu0 }
 0x17e   :  { %v459_v16 = vadd.f32 %v458_v63, %v361_v8 }
 0x17f   :  { %v2361_v62 = vpop.f32.mrf.mxu1 }
 0x180   :  { %v379_v13 = vadd.f32 %v2361_v62, %v270_v7 }
 0x181   :  { %v372_v2 = vpop.f32.mrf.mxu1 }
 0x182   :  { %v373_v17 = vadd.f32 %v372_v2, %v260_v11  ;;  %v907_v11 = vand.u32 4294901760, %v906_v3 }
 0x183   :  { %v2375_v6 = vpop.f32.mrf.mxu0 }
 0x184   :  { %v480_v24 = vadd.f32 %v2375_v6, %v379_v13 }
 0x185   :  { %v472_v9 = vpop.f32.mrf.mxu0  ;;  %v2386_v10 = vpop.f32.mrf.mxu1 }
 0x186   :  { %v565_v18 = vadd.f32 %v2386_v10, %v466_v12  ;;  %v473_v28 = vadd.f32 %v472_v9, %v373_v17  ;;  %v916_v9 = vsub.f32 %v2928_v57, %v915_v0 }
 0x187   :  { %v556_v14 = vpop.f32.mrf.mxu1  ;;  %v2400_v15 = vpop.f32.mrf.mxu0 }
 0x188   :  { %v557_v25 = vadd.f32 %v556_v14, %v459_v16  ;;  %v670_v29 = vadd.f32 %v2400_v15, %v565_v18  ;;  %v926_v14 = vsub.f32 %v2934_v61, %v925_v5  ;;  %v917_v18 = vand.u32 4294901760, %v916_v9 }
 0x189   :  { %v663_v20 = vpop.f32.mrf.mxu0 }
 0x18a   :  { %v2389_v22 = vpop.f32.mrf.mxu1  ;;  %v664_v32 = vadd.f32 %v663_v20, %v557_v25 }
 0x18b   :  { %v2403_v27 = vpop.f32.mrf.mxu0  ;;  %v581_v30 = vadd.f32 %v2389_v22, %v480_v24  ;;  %v927_v24 = vand.u32 4294901760, %v926_v14 }
 0x18c   :  { %v572_v26 = vpop.f32.mrf.mxu1 }
 0x18d   :  { %v573_v33 = vadd.f32 %v572_v26, %v473_v28  ;;  %v675_v35 = vpop.f32.mrf.mxu0  ;;  %v682_v37 = vadd.f32 %v2403_v27, %v581_v30 }
 0x18e   :  { %v2414_v31 = vpop.f32.mrf.mxu1 }
 0x18f   :  { %v763_v34 = vadd.f32 %v2414_v31, %v670_v29  ;;  %v676_v40 = vadd.f32 %v675_v35, %v573_v33 }
 0x190   :  { %v756_v36 = vpop.f32.mrf.mxu1 }
 0x191   :  { %2604 = vtanh.f32 %v763_v34  ;;  %v757_v38 = vadd.f32 %v756_v36, %v664_v32 }
 0x192   :  { %v2417_v39 = vpop.f32.mrf.mxu1 }
 0x193   :  { %2606 = vtanh.f32 %v757_v38  ;;  %v775_v41 = vadd.f32 %v2417_v39, %v682_v37  ;;  %v810_v37 = vpop.permute.xlu0 %809 }
 0x194   :  { %v768_v43 = vpop.f32.mrf.mxu1 }
 0x195   :  { %2608 = vtanh.f32 %v775_v41  ;;  %v769_v44 = vadd.f32 %v768_v43, %v676_v40  ;;  %v805_v40 = vpop.permute.xlu1 %804 }
 0x197   :  { %2610 = vtanh.f32 %v769_v44  ;;  %v800_v43 = vpop.permute.xlu0 %799 }
 0x199   :  { %v795_v46 = vpop.permute.xlu1 %794 }
 0x19e   :  { %v2605_v53 = vpop.eup %2604 }
 0x19f   :  { %v2925_v56 = vand.u32 4294901760, %v2605_v53 }
 0x1a0   :  { %v2607_v55 = vpop.eup %2606 }
 0x1a1   :  { %v2931_v60 = vand.u32 4294901760, %v2607_v55  ;;  %v973_v1 = vsub.f32 %v2605_v53, %v2925_v56 }
 0x1a2   :  { %v2609_v59 = vpop.eup %2608 }
 0x1a3   :  { %v2936_v62 = vand.u32 4294901760, %v2609_v59  ;;  %v980_v6 = vsub.f32 %v2607_v55, %v2931_v60  ;;  %v974_v10 = vand.u32 4294901760, %v973_v1 }
 0x1a4   :  { %v2611_v63 = vpop.eup %2610 }
 0x1a5   :  { %v2940_v2 = vand.u32 4294901760, %v2611_v63  ;;  %2418 = vmatprep.subr.mxu0 %v2936_v62  ;;  %v959_v4 = vsub.f32 %v2609_v59, %v2936_v62  ;;  %v981_v15 = vand.u32 4294901760, %v980_v6  ;;  %v975_v20 = vsub.f32 %v973_v1, %v974_v10 }
 0x1a6   :  { %2419 = vmatpush3.msra.mxu0 %v2936_v62 }
 0x1a7   :  { %2420 = vmatprep.subr.mxu0 %v2940_v2  ;;  %v960_v7 = vand.u32 4294901760, %v959_v4  ;;  %v966_v8 = vsub.f32 %v2611_v63, %v2940_v2  ;;  %v982_v25 = vsub.f32 %v980_v6, %v981_v15  ;;  %v976_v26 = vand.u32 4294901760, %v975_v20 }
 0x1a8   :  { %2421 = vmatpush3.msra.mxu0 %v2940_v2 }
 0x1a9   :  { %2422 = vmatprep.subr.mxu0 %v2925_v56  ;;  %v961_v12 = vsub.f32 %v959_v4, %v960_v7  ;;  %v967_v13 = vand.u32 4294901760, %v966_v8  ;;  %v983_v27 = vand.u32 4294901760, %v982_v25  ;;  %v2183_v25 = vld [vmem:[%s3120_s3 + $0x50] sm:$0xff] }
 0x1aa   :  { %2423 = vmatpush3.msra.mxu0 %v2925_v56 }
 0x1ab   :  { %2424 = vmatprep.subr.mxu0 %v2931_v60  ;;  %v962_v16 = vand.u32 4294901760, %v961_v12  ;;  %v968_v17 = vsub.f32 %v966_v8, %v967_v13 }
 0x1ac   :  { %2425 = vmatpush3.msra.mxu0 %v2931_v60 }
 0x1ad   :  { %2427 = vmatmul.mubr.f32.vlgmr.msra.gmra.mxu0 %v907_v11  ;;  %2432 = vmatprep.subr.mxu1 %v962_v16  ;;  %v969_v22 = vand.u32 4294901760, %v968_v17 }
 0x1ae   :  { %2446 = vmatprep.subr.mxu0 %v959_v4  ;;  %2433 = vmatpush3.msra.mxu1 %v962_v16 }
 0x1af   :  { %2447 = vmatpush3.msra.mxu0 %v959_v4  ;;  %2434 = vmatprep.subr.mxu1 %v969_v22 }
 0x1b0   :  { %2448 = vmatprep.subr.mxu0 %v966_v8  ;;  %2429 = vmatprep.mubr.f32.mxu0 %v917_v18  ;;  %v2182_v18 = vld [vmem:[%s3120_s3 + $0x48] sm:$0xff] }
 0x1b1   :  { %2435 = vmatpush3.msra.mxu1 %v969_v22  ;;  %2449 = vmatpush3.msra.mxu0 %v966_v8 }
 0x1b2   :  { %2430 = vmatmul.mubr.f32.gmra.mxu0 %v927_v24  ;;  %2436 = vmatprep.subr.mxu1 %v976_v26  ;;  %v1476_v24 = vsel %vm151_vm0, %v2182_v18, 0 }
 0x1b3   :  { %2450 = vmatprep.subr.mxu0 %v973_v1  ;;  %2437 = vmatpush3.msra.mxu1 %v976_v26  ;;  %v2184_v26 = vld [vmem:[%s3120_s3 + $0x58] sm:$0xff] }
 0x1b4   :  { %2451 = vmatpush3.msra.mxu0 %v973_v1  ;;  %2438 = vmatprep.subr.mxu1 %v983_v27 }
 0x1b5   :  { %2452 = vmatprep.subr.mxu0 %v980_v6  ;;  %2439 = vmatpush3.msra.mxu1 %v983_v27  ;;  %v3026_v27 = vand.u32 4294901760, %v1476_v24 }
 0x1b6   :  { %2453 = vmatpush3.msra.mxu0 %v980_v6  ;;  %2441 = vmatmul.mubr.f32.vlgmr.msra.gmra.mxu1 %v2914_v48 }
 0x1b7   :  { %2454 = vmatprep.mubr.f32.mxu0 %v2897_v50  ;;  %2460 = vmatprep.subr.mxu1 %v2936_v62  ;;  %v2181_v50 = vld [vmem:[%s3120_s3 + $0x40] sm:$0xff]  ;;  %s2656_s3 = smov [#allocation3]  }
 0x1b8   :  { %2474 = vmatprep.subr.mxu0 %v960_v7  ;;  %2455 = vmatmul.mubr.f32.vlgmr.msra.gmra.mxu0 %v2921_v52  ;;  %s2163_s22 = sshll.u32 %s2656_s3, 4  ;;  %s2164_s22 = int_to_ptr.vmem [resolvable:$true] %s2163_s22 }
 0x1b9   :  { %2461 = vmatpush3.msra.mxu1 %v2936_v62  ;;  %2475 = vmatpush3.msra.mxu0 %v960_v7  ;;  %s2632_s23 = scalar_lea.vmem %s2164_s22, 16  ;;  %s2636_s24 = scalar_lea.vmem %s2164_s22, 32 }
 0x1ba   :  { %2462 = vmatprep.subr.mxu1 %v2940_v2  ;;  %2476 = vmatprep.subr.mxu0 %v967_v13  ;;  %p2633_p0 = scmp.ne.s32.totalorder %s2164_s22, %s2632_s23  ;;  %p2637_p1 = scmp.lt.s32.totalorder %s2164_s22, %s2164_s22 }
 0x1bb   :  { %2443 = vmatprep.mubr.f32.mxu1 %v2918_v51  ;;  %2463 = vmatpush3.msra.mxu1 %v2940_v2  ;;  %p2638_p2 = scmp.lt.s32.totalorder %s2636_s24, %s2632_s23 }
 0x1bc   :  { %2477 = vmatpush3.msra.mxu0 %v967_v13  ;;  %2444 = vmatmul.mubr.f32.gmra.mxu1 %v2923_v54 }
 0x1bd   :  { %2464 = vmatprep.subr.mxu1 %v2925_v56  ;;  %2478 = vmatprep.subr.mxu0 %v974_v10  ;;  %p2639_p3 = por %p2638_p2, %p2637_p1 }
 0x1be   :  { %2457 = vmatprep.mubr.f32.mxu0 %v2928_v57  ;;  %2465 = vmatpush3.msra.mxu1 %v2925_v56 }
 0x1bf   :  { %2479 = vmatpush3.msra.mxu0 %v974_v10  ;;  %2466 = vmatprep.subr.mxu1 %v2931_v60  ;;  %p2640_p4 = pnand %p2639_p3, %p2633_p0 }
 0x1c0   :  { %2458 = vmatmul.mubr.f32.gmra.mxu0 %v2934_v61  ;;  %2480 = vmatprep.subr.mxu0 %v981_v15 }
 0x1c1   :  { %2467 = vmatpush3.msra.mxu1 %v2931_v60  ;;  %2468 = vmatprep.mubr.f32.mxu1 %v895_v19  ;;  %v1473_v19 = vsel %vm151_vm0, %v2181_v50, 0  ;;  %v1479_v50 = vsel %vm151_vm0, %v2183_v25, 0 }
 0x1c2   :  { %2481 = vmatpush3.msra.mxu0 %v981_v15  ;;  %2469 = vmatmul.mubr.f32.vlgmr.msra.gmra.mxu1 %v905_v58  ;;  %v3006_v28 = vand.u32 4294901760, %v1473_v19 }
 0x1c3   :  { %2488 = vmatprep.subr.mxu1 %v2936_v62  ;;  %2482 = vmatprep.mubr.f32.mxu0 %v2894_v49 }
 0x1c4   :  { %2489 = vmatpush3.msra.mxu1 %v2936_v62  ;;  %2483 = vmatmul.mubr.f32.vlgmr.msra.gmra.mxu0 %v2914_v48  ;;  %v3009_v29 = vsub.f32 %v1473_v19, %v3006_v28  ;;  %v1482_v19 = vsel %vm151_vm0, %v2184_v26, 0 }
 0x1c5   :  { %2490 = vmatprep.subr.mxu1 %v2940_v2  ;;  %2471 = vmatprep.mubr.f32.mxu1 %v915_v0 }
 0x1c6   :  { %2491 = vmatpush3.msra.mxu1 %v2940_v2  ;;  %2485 = vmatprep.mubr.f32.mxu0 %v2918_v51 }
 0x1c7   :  { %2472 = vmatmul.mubr.f32.gmra.mxu1 %v925_v5  ;;  %2492 = vmatprep.subr.mxu1 %v2925_v56 }
 0x1c8   :  { %2493 = vmatpush3.msra.mxu1 %v2925_v56  ;;  %2486 = vmatmul.mubr.f32.gmra.mxu0 %v2923_v54 }
 0x1c9   :  { %2494 = vmatprep.subr.mxu1 %v2931_v60  ;;  %2496 = vmatprep.mubr.f32.mxu1 %v2894_v49  ;;  %v1555_v49 = vand.u32 4294901760, %v3009_v29 }
 0x1ca   :  { %2495 = vmatpush3.msra.mxu1 %v2931_v60 }
 0x1cb   :  { %2497 = vmatmul.mubr.f32.vlgmr.msra.gmra.mxu1 %v2914_v48  ;;  %v1556_v30 = vsub.f32 %v3009_v29, %v1555_v49 }
 0x1cc   :  { %2499 = vmatprep.mubr.f32.mxu1 %v2918_v51 }
 0x1cd   :  { %v1557_v31 = vand.u32 4294901760, %v1556_v30  ;;  %v3030_v30 = vand.u32 4294901760, %v1479_v50 }
 0x1cf   :  { %2500 = vmatmul.mubr.f32.gmra.mxu1 %v2923_v54  ;;  %2510 = vmatprep.mubr.f32.mxu0 %v1557_v31  ;;  %v3033_v31 = vsub.f32 %v1476_v24, %v3026_v27 }
 0x1d0   :  { %2524 = vmatprep.mubr.f32.mxu1 %v3006_v28 }
 0x26d   :  { %v2428_v32 = vpop.f32.mrf.mxu0 }
 0x26e   :  { %v910_v44 = vadd.f32 %v2428_v32, %v800_v43 }
 0x26f   :  { %v899_v33 = vpop.f32.mrf.mxu0 }
 0x270   :  { %v900_v47 = vadd.f32 %v899_v33, %v795_v46  ;;  %v3035_v33 = vand.u32 4294901760, %v1482_v19 }
 0x272   :  { %v2431_v34 = vpop.f32.mrf.mxu0 }
 0x273   :  { %v930_v23 = vadd.f32 %v2431_v34, %v810_v37  ;;  %v1565_v37 = vand.u32 4294901760, %v3033_v31 }
 0x274   :  { %v919_v35 = vpop.f32.mrf.mxu0 }
 0x275   :  { %v920_v54 = vadd.f32 %v919_v35, %v805_v40  ;;  %v3046_v40 = vsub.f32 %v1482_v19, %v3035_v33  ;;  %v1566_v46 = vsub.f32 %v3033_v31, %v1565_v37 }
 0x276   :  { %v2442_v36 = vpop.f32.mrf.mxu1 }
 0x277   :  { %v1027_v48 = vadd.f32 %v2442_v36, %v910_v44  ;;  %v3040_v36 = vsub.f32 %v1479_v50, %v3030_v30 }
 0x278   :  { %v1020_v38 = vpop.f32.mrf.mxu1  ;;  %v2456_v39 = vpop.f32.mrf.mxu0 }
 0x279   :  { %v1021_v51 = vadd.f32 %v1020_v38, %v900_v47  ;;  %v1126_v55 = vadd.f32 %v2456_v39, %v1027_v48  ;;  %v1575_v43 = vand.u32 4294901760, %v3040_v36  ;;  %v1585_v48 = vand.u32 4294901760, %v3046_v40 }
 0x27a   :  { %v1118_v42 = vpop.f32.mrf.mxu0 }
 0x27b   :  { %v1119_v59 = vadd.f32 %v1118_v42, %v1021_v51 }
 0x27c   :  { %v2445_v41 = vpop.f32.mrf.mxu1 }
 0x27d   :  { %v1039_v56 = vadd.f32 %v2445_v41, %v930_v23 }
 0x27e   :  { %v1032_v45 = vpop.f32.mrf.mxu1 }
 0x27f   :  { %v1033_v60 = vadd.f32 %v1032_v45, %v920_v54  ;;  %v1567_v54 = vand.u32 4294901760, %v1566_v46 }
 0x280   :  { %v2459_v21 = vpop.f32.mrf.mxu0 }
 0x281   :  { %v1140_v0 = vadd.f32 %v2459_v21, %v1039_v56 }
 0x282   :  { %v1132_v52 = vpop.f32.mrf.mxu0  ;;  %v2470_v53 = vpop.f32.mrf.mxu1 }
 0x283   :  { %v1225_v61 = vadd.f32 %v2470_v53, %v1126_v55  ;;  %v1133_v4 = vadd.f32 %v1132_v52, %v1033_v60  ;;  %v1576_v52 = vsub.f32 %v3040_v36, %v1575_v43 }
 0x284   :  { %v1216_v57 = vpop.f32.mrf.mxu1  ;;  %v2484_v58 = vpop.f32.mrf.mxu0 }
 0x285   :  { %v1217_v1 = vadd.f32 %v1216_v57, %v1119_v59  ;;  %v1330_v5 = vadd.f32 %v2484_v58, %v1225_v61  ;;  %v1586_v57 = vsub.f32 %v3046_v40, %v1585_v48  ;;  %v1577_v61 = vand.u32 4294901760, %v1576_v52 }
 0x286   :  { %v1323_v62 = vpop.f32.mrf.mxu0 }
 0x287   :  { %v2473_v63 = vpop.f32.mrf.mxu1  ;;  %v1324_v8 = vadd.f32 %v1323_v62, %v1217_v1 }
 0x288   :  { %v2487_v3 = vpop.f32.mrf.mxu0  ;;  %v1241_v6 = vadd.f32 %v2473_v63, %v1140_v0  ;;  %v1587_v0 = vand.u32 4294901760, %v1586_v57 }
 0x289   :  { %v1232_v2 = vpop.f32.mrf.mxu1 }
 0x28a   :  { %v1233_v9 = vadd.f32 %v1232_v2, %v1133_v4  ;;  %v1335_v11 = vpop.f32.mrf.mxu0  ;;  %v1342_v13 = vadd.f32 %v2487_v3, %v1241_v6 }
 0x28b   :  { %v2498_v7 = vpop.f32.mrf.mxu1 }
 0x28c   :  { %v1423_v10 = vadd.f32 %v2498_v7, %v1330_v5  ;;  %v1336_v16 = vadd.f32 %v1335_v11, %v1233_v9  ;;  %v1460_v9 = vpop.permute.xlu1 %1459 }
 0x28d   :  { %v1416_v12 = vpop.f32.mrf.mxu1 }
 0x28e   :  { %2612 = vtanh.f32 %v1423_v10  ;;  %v1417_v14 = vadd.f32 %v1416_v12, %v1324_v8  ;;  %v1455_v12 = vpop.permute.xlu0 %1454 }
 0x28f   :  { %v2501_v15 = vpop.f32.mrf.mxu1 }
 0x290   :  { %2614 = vtanh.f32 %v1417_v14  ;;  %v1435_v17 = vadd.f32 %v2501_v15, %v1342_v13 }
 0x291   :  { %v1428_v20 = vpop.f32.mrf.mxu1 }
 0x292   :  { %2616 = vtanh.f32 %v1435_v17  ;;  %v1429_v22 = vadd.f32 %v1428_v20, %v1336_v16  ;;  %v1470_v17 = vpop.permute.xlu1 %1469  ;;  %v1465_v25 = vpop.permute.xlu0 %1464 }
 0x294   :  { %2618 = vtanh.f32 %v1429_v22 }
 0x29b   :  { %v2613_v32 = vpop.eup %2612 }
 0x29c   :  { %v3037_v35 = vand.u32 4294901760, %v2613_v32 }
 0x29d   :  { %v2615_v34 = vpop.eup %2614 }
 0x29e   :  { %v3043_v39 = vand.u32 4294901760, %v2615_v34  ;;  %v1633_v44 = vsub.f32 %v2613_v32, %v3037_v35 }
 0x29f   :  { %v2617_v38 = vpop.eup %2616 }
 0x2a0   :  { %v3048_v41 = vand.u32 4294901760, %v2617_v38  ;;  %v1640_v21 = vsub.f32 %v2615_v34, %v3043_v39  ;;  %v1634_v53 = vand.u32 4294901760, %v1633_v44 }
 0x2a1   :  { %v2619_v42 = vpop.eup %2618 }
 0x2a2   :  { %v3052_v45 = vand.u32 4294901760, %v2619_v42  ;;  %2502 = vmatprep.subr.mxu0 %v3048_v41  ;;  %v1619_v47 = vsub.f32 %v2617_v38, %v3048_v41  ;;  %v1641_v58 = vand.u32 4294901760, %v1640_v21  ;;  %v1635_v62 = vsub.f32 %v1633_v44, %v1634_v53 }
 0x2a3   :  { %2503 = vmatpush3.msra.mxu0 %v3048_v41 }
 0x2a4   :  { %2504 = vmatprep.subr.mxu0 %v3052_v45  ;;  %v1620_v23 = vand.u32 4294901760, %v1619_v47  ;;  %v1626_v51 = vsub.f32 %v2619_v42, %v3052_v45  ;;  %v1642_v1 = vsub.f32 %v1640_v21, %v1641_v58  ;;  %v1636_v2 = vand.u32 4294901760, %v1635_v62 }
 0x2a5   :  { %2505 = vmatpush3.msra.mxu0 %v3052_v45 }
 0x2a6   :  { %2506 = vmatprep.subr.mxu0 %v3037_v35  ;;  %v1621_v55 = vsub.f32 %v1619_v47, %v1620_v23  ;;  %v1627_v56 = vand.u32 4294901760, %v1626_v51  ;;  %v1643_v3 = vand.u32 4294901760, %v1642_v1 }
 0x2a7   :  { %2507 = vmatpush3.msra.mxu0 %v3037_v35 }
 0x2a8   :  { %2508 = vmatprep.subr.mxu0 %v3043_v39  ;;  %v1622_v59 = vand.u32 4294901760, %v1621_v55  ;;  %v1628_v60 = vsub.f32 %v1626_v51, %v1627_v56 }
 0x2a9   :  { %2509 = vmatpush3.msra.mxu0 %v3043_v39 }
 0x2aa   :  { %2511 = vmatmul.mubr.f32.vlgmr.msra.gmra.mxu0 %v1567_v54  ;;  %2516 = vmatprep.subr.mxu1 %v1622_v59  ;;  %v1629_v63 = vand.u32 4294901760, %v1628_v60 }
 0x2ab   :  { %2530 = vmatprep.subr.mxu0 %v1619_v47  ;;  %2517 = vmatpush3.msra.mxu1 %v1622_v59  ;;  %v2114_v59 = vpop.permute.xlu1 %2113 }
 0x2ac   :  { %2531 = vmatpush3.msra.mxu0 %v1619_v47  ;;  %2518 = vmatprep.subr.mxu1 %v1629_v63 }
 0x2ad   :  { %2532 = vmatprep.subr.mxu0 %v1626_v51  ;;  %2513 = vmatprep.mubr.f32.mxu0 %v1577_v61 }
 0x2ae   :  { %2519 = vmatpush3.msra.mxu1 %v1629_v63  ;;  %2533 = vmatpush3.msra.mxu0 %v1626_v51 }
 0x2af   :  { %2514 = vmatmul.mubr.f32.gmra.mxu0 %v1587_v0  ;;  %2520 = vmatprep.subr.mxu1 %v1636_v2 }
 0x2b0   :  { %2534 = vmatprep.subr.mxu0 %v1633_v44  ;;  %2521 = vmatpush3.msra.mxu1 %v1636_v2 }
 0x2b1   :  { %2535 = vmatpush3.msra.mxu0 %v1633_v44  ;;  %2522 = vmatprep.subr.mxu1 %v1643_v3 }
 0x2b2   :  { %2536 = vmatprep.subr.mxu0 %v1640_v21  ;;  %2523 = vmatpush3.msra.mxu1 %v1643_v3  ;;  %v2124_v3 = vpop.permute.xlu1 %2123 }
 0x2b3   :  { %2537 = vmatpush3.msra.mxu0 %v1640_v21  ;;  %2525 = vmatmul.mubr.f32.vlgmr.msra.gmra.mxu1 %v3026_v27 }
 0x2b4   :  { %2538 = vmatprep.mubr.f32.mxu0 %v3009_v29  ;;  %2544 = vmatprep.subr.mxu1 %v3048_v41 }
 0x2b5   :  { %2558 = vmatprep.subr.mxu0 %v1620_v23  ;;  %2539 = vmatmul.mubr.f32.vlgmr.msra.gmra.mxu0 %v3033_v31 }
 0x2b6   :  { %2545 = vmatpush3.msra.mxu1 %v3048_v41  ;;  %2559 = vmatpush3.msra.mxu0 %v1620_v23 }
 0x2b7   :  { %2546 = vmatprep.subr.mxu1 %v3052_v45  ;;  %2560 = vmatprep.subr.mxu0 %v1627_v56 }
 0x2b8   :  { %2527 = vmatprep.mubr.f32.mxu1 %v3030_v30  ;;  %2547 = vmatpush3.msra.mxu1 %v3052_v45 }
 0x2b9   :  { %2561 = vmatpush3.msra.mxu0 %v1627_v56  ;;  %2528 = vmatmul.mubr.f32.gmra.mxu1 %v3035_v33  ;;  %v2109_v56 = vpop.permute.xlu0 %2108 }
 0x2ba   :  { %2548 = vmatprep.subr.mxu1 %v3037_v35  ;;  %2562 = vmatprep.subr.mxu0 %v1634_v53 }
 0x2bb   :  { %2541 = vmatprep.mubr.f32.mxu0 %v3040_v36  ;;  %2549 = vmatpush3.msra.mxu1 %v3037_v35 }
 0x2bc   :  { %2563 = vmatpush3.msra.mxu0 %v1634_v53  ;;  %2550 = vmatprep.subr.mxu1 %v3043_v39 }
 0x2bd   :  { %2542 = vmatmul.mubr.f32.gmra.mxu0 %v3046_v40  ;;  %2564 = vmatprep.subr.mxu0 %v1641_v58  ;;  %v2119_v0 = vpop.permute.xlu0 %2118 }
 0x2be   :  { %2551 = vmatpush3.msra.mxu1 %v3043_v39  ;;  %2552 = vmatprep.mubr.f32.mxu1 %v1555_v49 }
 0x2bf   :  { %2565 = vmatpush3.msra.mxu0 %v1641_v58  ;;  %2553 = vmatmul.mubr.f32.vlgmr.msra.gmra.mxu1 %v1565_v37 }
 0x2c0   :  { %2572 = vmatprep.subr.mxu1 %v3048_v41  ;;  %2566 = vmatprep.mubr.f32.mxu0 %v3006_v28 }
 0x2c1   :  { %2573 = vmatpush3.msra.mxu1 %v3048_v41  ;;  %2567 = vmatmul.mubr.f32.vlgmr.msra.gmra.mxu0 %v3026_v27 }
 0x2c2   :  { %2574 = vmatprep.subr.mxu1 %v3052_v45  ;;  %2555 = vmatprep.mubr.f32.mxu1 %v1575_v43 }
 0x2c3   :  { %2575 = vmatpush3.msra.mxu1 %v3052_v45  ;;  %2569 = vmatprep.mubr.f32.mxu0 %v3030_v30 }
 0x2c4   :  { %2556 = vmatmul.mubr.f32.gmra.mxu1 %v1585_v48  ;;  %2576 = vmatprep.subr.mxu1 %v3037_v35 }
 0x2c5   :  { %2577 = vmatpush3.msra.mxu1 %v3037_v35  ;;  %2570 = vmatmul.mubr.f32.gmra.mxu0 %v3035_v33 }
 0x2c6   :  { %2578 = vmatprep.subr.mxu1 %v3043_v39  ;;  %2580 = vmatprep.mubr.f32.mxu1 %v3006_v28 }
 0x2c7   :  { %2579 = vmatpush3.msra.mxu1 %v3043_v39 }
 0x2c8   :  { %2581 = vmatmul.mubr.f32.vlgmr.msra.gmra.mxu1 %v3026_v27 }
 0x2c9   :  { %2583 = vmatprep.mubr.f32.mxu1 %v3030_v30 }
 0x2cc   :  { %2584 = vmatmul.mubr.f32.gmra.mxu1 %v3035_v33 }
 0x36a   :  { %v2512_v29 = vpop.f32.mrf.mxu0 }
 0x36b   :  { %v1570_v28 = vadd.f32 %v2512_v29, %v1460_v9 }
 0x36c   :  { %v1559_v49 = vpop.f32.mrf.mxu0 }
 0x36d   :  { %v1560_v14 = vadd.f32 %v1559_v49, %v1455_v12  ;;  %v2143_v12 = vpop.permute.xlu0 %2142 }
 0x36f   :  { %v2515_v4 = vpop.f32.mrf.mxu0 }
 0x370   :  { %v1590_v18 = vadd.f32 %v2515_v4, %v1470_v17  ;;  %v2145_v4 = vlaneseq }
 0x371   :  { %v1579_v5 = vpop.f32.mrf.mxu0 }
 0x372   :  { %v1580_v26 = vadd.f32 %v1579_v5, %v1465_v25 }
 0x373   :  { %v2526_v6 = vpop.f32.mrf.mxu1 }
 0x374   :  { %v1687_v15 = vadd.f32 %v2526_v6, %v1570_v28 }
 0x375   :  { %v1680_v7 = vpop.f32.mrf.mxu1  ;;  %v2540_v8 = vpop.f32.mrf.mxu0 }
 0x376   :  { %v1681_v20 = vadd.f32 %v1680_v7, %v1560_v14  ;;  %v1786_v27 = vadd.f32 %v2540_v8, %v1687_v15  ;;  %v2146_v7 = vshrl.u32 %v2145_v4, 7 }
 0x377   :  { %v1778_v11 = vpop.f32.mrf.mxu0 }
 0x378   :  { %v1779_v31 = vadd.f32 %v1778_v11, %v1681_v20 }
 0x379   :  { %v2529_v10 = vpop.f32.mrf.mxu1 }
 0x37a   :  { %v1699_v50 = vadd.f32 %v2529_v10, %v1590_v18  ;;  %v2147_v10 = vsub.s32 0, %v2146_v7 }
 0x37b   :  { %v1692_v13 = vpop.f32.mrf.mxu1 }
 0x37c   :  { %v1693_v32 = vadd.f32 %v1692_v13, %v1580_v26  ;;  %v2148_v13 = vrot.slane %v2143_v12, %v2147_v10 }
 0x37d   :  { %v2543_v16 = vpop.f32.mrf.mxu0 }
 0x37e   :  { %v1800_v36 = vadd.f32 %v2543_v16, %v1699_v50 }
 0x37f   :  { %v1792_v22 = vpop.f32.mrf.mxu0  ;;  %v2554_v24 = vpop.f32.mrf.mxu1 }
 0x380   :  { %v1885_v33 = vadd.f32 %v2554_v24, %v1786_v27  ;;  %v1793_v40 = vadd.f32 %v1792_v22, %v1693_v32 }
 0x381   :  { %v1876_v19 = vpop.f32.mrf.mxu1  ;;  %v2568_v30 = vpop.f32.mrf.mxu0 }
 0x382   :  { %v1877_v37 = vadd.f32 %v1876_v19, %v1779_v31  ;;  %v1990_v41 = vadd.f32 %v2568_v30, %v1885_v33 }
 0x383   :  { %v1983_v34 = vpop.f32.mrf.mxu0 }
 0x384   :  { %v2557_v35 = vpop.f32.mrf.mxu1  ;;  %v1984_v44 = vadd.f32 %v1983_v34, %v1877_v37 }
 0x385   :  { %v2571_v39 = vpop.f32.mrf.mxu0  ;;  %v1901_v42 = vadd.f32 %v2557_v35, %v1800_v36 }
 0x386   :  { %v1892_v38 = vpop.f32.mrf.mxu1 }
 0x387   :  { %v1893_v45 = vadd.f32 %v1892_v38, %v1793_v40  ;;  %v1995_v47 = vpop.f32.mrf.mxu0  ;;  %v2002_v21 = vadd.f32 %v2571_v39, %v1901_v42 }
 0x388   :  { %v2582_v43 = vpop.f32.mrf.mxu1 }
 0x389   :  { %v2083_v46 = vadd.f32 %v2582_v43, %v1990_v41  ;;  %v1996_v52 = vadd.f32 %v1995_v47, %v1893_v45 }
 0x38a   :  { %v2076_v48 = vpop.f32.mrf.mxu1 }
 0x38b   :  { %v2077_v23 = vadd.f32 %v2076_v48, %v1984_v44  ;;  %2620 = vtanh.f32 %v2083_v46 }
 0x38c   :  { %v2585_v51 = vpop.f32.mrf.mxu1 }
 0x38d   :  { %2622 = vtanh.f32 %v2077_v23  ;;  %v2095_v53 = vadd.f32 %v2585_v51, %v2002_v21 }
 0x38e   :  { %v2088_v54 = vpop.f32.mrf.mxu1 }
 0x38f   :  { %v2089_v55 = vadd.f32 %v2088_v54, %v1996_v52  ;;  %2624 = vtanh.f32 %v2095_v53 }
 0x391   :  { %2626 = vtanh.f32 %v2089_v55 }
 0x398   :  { %v2621_v57 = vpop.eup %2620 }
 0x399   :  { %v2127_v62 = vmul.f32 %v2621_v57, %v2114_v59 }
 0x39a   :  { %v2623_v58 = vpop.eup %2622 }
 0x39b   :  { %v2126_v60 = vmul.f32 %v2623_v58, %v2109_v56 }
 0x39c   :  { %v2625_v61 = vpop.eup %2624 }
 0x39d   :  { %v2130_v1 = vadd.f32 %v2127_v62, %v2126_v60  ;;  %v2129_v29 = vmul.f32 %v2625_v61, %v2124_v3 }
 0x39e   :  { %v2627_v63 = vpop.eup %2626 }
 0x39f   :  { %v2128_v2 = vmul.f32 %v2627_v63, %v2119_v0 }
 0x3a1   :  { %v2131_v49 = vadd.f32 %v2130_v1, %v2128_v2 }
 0x3a3   :  { %v2132_v5 = vadd.f32 %v2131_v49, %v2129_v29 }
 0x3a5   :  { %v2133_v6 = vrot.slane %v2132_v5, 4 }
 0x3a7   :  { %v2134_v8 = vadd.f32 %v2133_v6, %v2132_v5 }
 0x3a9   :  { %v2135_v9 = vrot.slane %v2134_v8, 2 }
 0x3ab   :  { %v2136_v11 = vadd.f32 %v2135_v9, %v2134_v8 }
 0x3ad   :  { %v2137_v28 = vrot.slane %v2136_v11, 1 }
 0x3af   :  { %v2138_v14 = vadd.f32 %v2137_v28, %v2136_v11 }
 0x3b1   :  { %v2149_v15 = vadd.f32 %v2148_v13, %v2138_v14 }
 0x3b3   :  { %v2189_v16 = vmul.f32 -1.442695, %v2149_v15 }
 0x3b5   :  { %2628 = vpow2.f32 %v2189_v16 }
 0x3c2   :  { %v2629_v17 = vpop.eup %2628 }
 0x3c3   :  { %v2153_v18 = vadd.f32 1.0, %v2629_v17 }
 0x3c5   :  { %2630 = vrcp.f32 %v2153_v18 }
 0x3d2   :  { %v2631_v20 = vpop.eup %2630 }
 0x3d3   :  { %2156 = vst [vmem:[#allocation3] sm:$0x1] %v2631_v20 }
 0x3d4   :  { %2643 = shalt.err (!%p2640_p4)
}
 0x3d5   :  { %2166 = dma.vmem_to_hbm [thread:$0]  %s2164_s22, 16, %s3124_s7, [#allocation4]  }
 0x3d6   :  { %2652 = dma.done.wait [#allocation4], 16  }
 0x3d7   :  { %2653 = vsyncadd [#allocation4], 4294967280 }
 0x3d8   :  { %2170 = vsyncpa [#allocation4], 1 }

</bundles_post_ra>
